<compile_context>
chip_gen: v5e
topology: v5e:2x2
jax: 0.10.0
libtpu: 0.0.40
codegen_flags: <defaults>
</compile_context>

<pallas_src>
import jax
import jax.numpy as jnp
from jax.experimental import pallas as pl
from jax.experimental.pallas import tpu as pltpu

# ---------------------------- configuration ----------------------------
B = 2                           # batch
IN_CH = 3                       # image channels
IMG = 64                        # image spatial size
PATCH = 8                       # synthetic backbone patch size
HP = WP = IMG // PATCH          # 8 x 8 patch grid
N_FEATS = 32                    # backbone embed dim (n_feats)
DIM = 16                        # projection dim (opt['dim'], continuous=True)
N = B * HP * WP                 # total patch tokens = 128 (full lane width)
P_FLAT = IN_CH * PATCH * PATCH  # flattened patch size = 192
DC = DIM + N_FEATS              # 48 rows of the fused weight / bias

# packed parameter buffer layout (bf16), shape (PROW, PCOL) = (112, 192):
#   rows [0:48)   cols [0:192)  : Wfused = [W1|W2]^T @ We^T
#   rows [48:64)  cols [0:32)   : W3^T
#   rows [64:112) cols [0:128)  : bcat replicated across lanes
PROW = DC + DIM + DC            # 112
PCOL = P_FLAT                   # 192


# ----------------------------- Pallas kernel ---------------------------
def stego_fused_kernel(pT_ref, par_ref, o_ref):
    """Gridless fused forward (channels on sublanes, tokens on lanes).

    pT  : (P_FLAT, N)  bf16   flattened image patches, transposed
    par : (PROW, PCOL) bf16   packed parameters (see layout above)
    o   : (DIM, N)     f32    code^T (lane-dense output)
    """
    wfused = par_ref[0:DC, :]                               # (48, 192) bf16
    w3T = par_ref[DC:DC + DIM, 0:N_FEATS]                   # (16, 32)  bf16
    bcat = par_ref[DC + DIM:PROW, 0:N].astype(jnp.float32)  # (48, 128) f32

    # fused backbone + cluster1 + cluster2-first-conv matmul, biases folded in
    ycat = jnp.dot(wfused, pT_ref[...],
                   preferred_element_type=jnp.float32) + bcat
    y1 = ycat[:DIM, :]                                      # cluster1 (+ b1+b3)
    h = jnp.maximum(ycat[DIM:, :], 0.0)                     # ReLU branch (+ b2)
    y2 = jnp.dot(w3T, h.astype(jnp.bfloat16),
                 preferred_element_type=jnp.float32)
    o_ref[...] = (y1 + y2).astype(o_ref.dtype)


def stego_code_pallas(pT_bf16, params_packed):
    """pT: (P_FLAT, N) bf16, params: (PROW, PCOL) bf16 -> code^T: (DIM, N) f32."""
    vmem = pl.BlockSpec(memory_space=pltpu.MemorySpace.VMEM)
    return pl.pallas_call(
        stego_fused_kernel,
        out_shape=jax.ShapeDtypeStruct((DIM, N), jnp.float32),
        in_specs=[vmem, vmem],
        out_specs=vmem,
    )(pT_bf16, params_packed)


# ------------------------------ glue (JAX) ------------------------------
def extract_patches_T(img_nchw):
    """(B, C, H, W) -> (C*PATCH*PATCH, B*HP*WP) with a single permutation."""
    b, c, h, w = img_nchw.shape
    hp, wp = h // PATCH, w // PATCH
    x = img_nchw.reshape(b, c, hp, PATCH, wp, PATCH)
    x = x.transpose(1, 3, 5, 0, 2, 4)            # (c, ph, pw, b, hp, wp)
    return x.reshape(c * PATCH * PATCH, b * hp * wp)


def fold_params(params):
    """Fold backbone + biases into the cluster weights; pack into one bf16 buffer."""
    we = params["we"]                                        # (P_FLAT, C)
    be = params["be"].reshape(N_FEATS)                       # (C,)
    wcatT = jnp.concatenate([params["w1"], params["w2"]], axis=1).T   # (48, C)
    wfused = wcatT @ we.T                                    # (48, P_FLAT)
    fold = wcatT @ be                                        # (48,)
    b13 = (params["b1"] + params["b3"]).reshape(DIM)
    b2 = params["b2"].reshape(N_FEATS)
    bcat = jnp.concatenate([b13, b2]) + fold                 # (48,)
    w3T = params["w3"].T                                     # (DIM, C)

    buf = jnp.zeros((PROW, PCOL), jnp.float32)
    buf = buf.at[0:DC, 0:P_FLAT].set(wfused)
    buf = buf.at[DC:DC + DIM, 0:N_FEATS].set(w3T)
    buf = buf.at[DC + DIM:PROW, 0:N].set(jnp.broadcast_to(bcat[:, None], (DC, N)))
    return buf.astype(jnp.bfloat16)


@jax.jit
def stego_forward(img_nchw, params):
    """Full STEGOmodel.forward: returns `code` in NCHW = (B, DIM, HP, WP)."""
    pT = extract_patches_T(img_nchw).astype(jnp.bfloat16)    # (P_FLAT, N)
    packed = fold_params(params)                             # (PROW, PCOL)
    codeT = stego_code_pallas(pT, packed)                    # (DIM, N)
    b = img_nchw.shape[0]
    return codeT.reshape(DIM, b, HP, WP).transpose(1, 0, 2, 3)


def init_params(key):
    ks = jax.random.split(key, 8)
    # synthetic frozen backbone (patch embedding)
    we = jax.random.normal(ks[0], (P_FLAT, N_FEATS), jnp.float32) * 0.02
    be = jax.random.normal(ks[1], (1, 1, 1, N_FEATS), jnp.float32) * 0.02
    # cluster1: Conv2d(n_feats, dim, 1x1)
    w1 = jax.random.normal(ks[2], (N_FEATS, DIM), jnp.float32) * 0.05
    b1 = jax.random.normal(ks[3], (1, DIM), jnp.float32) * 0.05
    # cluster2: Conv2d(n_feats, n_feats, 1x1) -> ReLU -> Conv2d(n_feats, dim, 1x1)
    w2 = jax.random.normal(ks[4], (N_FEATS, N_FEATS), jnp.float32) * 0.05
    b2 = jax.random.normal(ks[5], (1, N_FEATS), jnp.float32) * 0.05
    w3 = jax.random.normal(ks[6], (N_FEATS, DIM), jnp.float32) * 0.05
    b3 = jax.random.normal(ks[7], (1, DIM), jnp.float32) * 0.05
    return dict(we=we, be=be, w1=w1, b1=b1, w2=w2, b2=b2, w3=w3, b3=b3)


def reference_forward(img_nchw, params):
    """Pure-JAX f32 reference of the same math (untransposed, unfolded)."""
    b, c, h, w = img_nchw.shape
    hp, wp = h // PATCH, w // PATCH
    x = img_nchw.reshape(b, c, hp, PATCH, wp, PATCH)
    x = x.transpose(0, 2, 4, 1, 3, 5).reshape(b, hp, wp, c * PATCH * PATCH)
    feat = x @ params["we"] + params["be"]
    xf = feat.reshape(-1, N_FEATS)
    y1 = xf @ params["w1"] + params["b1"]
    hdd = jnp.maximum(xf @ params["w2"] + params["b2"], 0.0)
    y2 = hdd @ params["w3"] + params["b3"]
    code = (y1 + y2).reshape(b, hp, wp, DIM).transpose(0, 3, 1, 2)
    return code


if __name__ == "__main__":
    key = jax.random.PRNGKey(0)
    k_img, k_par = jax.random.split(key)
    x = jax.random.normal(k_img, (B, IN_CH, IMG, IMG), jnp.float32)  # NCHW input
    params = init_params(k_par)

    code = jax.block_until_ready(stego_forward(x, params))
    ref = jax.block_until_ready(reference_forward(x, params))

    assert code.shape == (B, DIM, HP, WP), code.shape
    # bf16 matmul operands (f32 accumulation) -> loosened tolerance vs f32 ref
    assert jnp.allclose(code, ref, atol=2e-2, rtol=2e-2), "mismatch vs reference"

    print("KERNEL_OK")
</pallas_src>

<mosaic_0001>
module attributes {stable_mosaic.version = 11 : i64} {
  func.func @stego_fused_kernel(%arg0: memref<192x128xbf16, #tpu.memory_space<vmem>>, %arg1: memref<112x192xbf16, #tpu.memory_space<vmem>>, %arg2: memref<16x128xf32, #tpu.memory_space<vmem>>) attributes {dimension_semantics = [], scalar_prefetch = 0 : i64, scratch_operands = 0 : i64, tpu.core_type = #tpu.core_type<tc>} {
    %c0 = arith.constant 0 : index
    %c0_0 = arith.constant 0 : index
    %0 = vector.load %arg1[%c0, %c0_0] : memref<112x192xbf16, #tpu.memory_space<vmem>>, vector<48x192xbf16>
    %c48 = arith.constant 48 : index
    %c0_1 = arith.constant 0 : index
    %1 = vector.load %arg1[%c48, %c0_1] : memref<112x192xbf16, #tpu.memory_space<vmem>>, vector<16x32xbf16>
    %c64 = arith.constant 64 : index
    %c0_2 = arith.constant 0 : index
    %2 = vector.load %arg1[%c64, %c0_2] : memref<112x192xbf16, #tpu.memory_space<vmem>>, vector<48x128xbf16>
    %3 = arith.extf %2 : vector<48x128xbf16> to vector<48x128xf32>
    %c0_3 = arith.constant 0 : index
    %c0_4 = arith.constant 0 : index
    %4 = vector.load %arg0[%c0_3, %c0_4] : memref<192x128xbf16, #tpu.memory_space<vmem>>, vector<192x128xbf16>
    %cst = arith.constant dense<0.000000e+00> : vector<48x128xf32>
    %5 = tpu.matmul %0, %4, %cst {dimension_numbers = #tpu.dot_dimension_numbers<[1], [0], [0], [1], [0, 0, 1, 1], [], []>} : vector<48x192xbf16>, vector<192x128xbf16>, vector<48x128xf32> -> vector<48x128xf32>
    %6 = arith.addf %5, %3 : vector<48x128xf32>
    %7 = vector.extract_strided_slice %6 {offsets = [0, 0], sizes = [16, 128], strides = [1, 1]} : vector<48x128xf32> to vector<16x128xf32>
    %8 = vector.extract_strided_slice %6 {offsets = [16, 0], sizes = [32, 128], strides = [1, 1]} : vector<48x128xf32> to vector<32x128xf32>
    %cst_5 = arith.constant 0.000000e+00 : f32
    %9 = vector.broadcast %cst_5 : f32 to vector<32x128xf32>
    %10 = arith.maximumf %8, %9 : vector<32x128xf32>
    %11 = arith.truncf %10 : vector<32x128xf32> to vector<32x128xbf16>
    %cst_6 = arith.constant dense<0.000000e+00> : vector<16x128xf32>
    %12 = tpu.matmul %1, %11, %cst_6 {dimension_numbers = #tpu.dot_dimension_numbers<[1], [0], [0], [1], [0, 0, 1, 1], [], []>} : vector<16x32xbf16>, vector<32x128xbf16>, vector<16x128xf32> -> vector<16x128xf32>
    %13 = arith.addf %7, %12 : vector<16x128xf32>
    %c0_7 = arith.constant 0 : index
    %c0_8 = arith.constant 0 : index
    %14 = vector.load %arg2[%c0_7, %c0_8] : memref<16x128xf32, #tpu.memory_space<vmem>>, vector<16x128xf32>
    tpu.vector_store %arg2[%c0_7, %c0_8], %13 {strides = array<i32>} : memref<16x128xf32, #tpu.memory_space<vmem>>, vector<16x128xf32>,
    return
  }
}

</mosaic_0001>

<bundles_post_ra>
// kernel: stego_forward.1
= control target key start
LH: loop header
LB: loop body
LE: loop exit
PB: predicated region body
PF: predicated region fallthrough
CT: control target
= control target key end

     0   :  { %vm155_vm0 = vcmask 523264   ;;  %vm224_vm1 = vcmask 261120   ;;  %s477_s0 = inlined_call_operand.vmem [shape: bf16[192,128], index: 0, kind: input, shape index: {}]   ;;  %s478_s1 = inlined_call_operand.vmem [shape: bf16[112,192], index: 1, kind: input, shape index: {}]   ;;  %s479_s2 = inlined_call_operand.vmem [shape: f32[16,128], index: 2, kind: output, shape index: {}]  }
   0x1   :  { %v344_v0 = vld [vmem:[%s477_s0 + $0x38] sm:$0xff]  ;;  %v343_v2 = vld [vmem:[%s477_s0 + $0x30] sm:$0xff]  ;;  %v342_v4 = vld [vmem:[%s477_s0 + $0x28] sm:$0xff] }
   0x2   :  { %v348_v1 = vld [vmem:[%s477_s0 + $0x58] sm:$0xff]  ;;  %165 = vmatpush.bf16.msra.mxu0 %v344_v0  ;;  %349 = vmatpush.bf16.msra.mxu3 %v344_v0  ;;  %v347_v3 = vld [vmem:[%s477_s0 + $0x50] sm:$0xff]  ;;  %v346_v5 = vld [vmem:[%s477_s0 + $0x48] sm:$0xff] }
   0x3   :  { %193 = vmatpush.bf16.msra.mxu1 %v348_v1  ;;  %v341_v6 = vld [vmem:[%s477_s0 + $0x20] sm:$0xff]  ;;  %v254_v9 = vld [vmem:[%s478_s1 + $0x8] sm:$0xf0]  ;;  %v340_v11 = vld [vmem:[%s477_s0 + $0x18] sm:$0xff] }
   0x4   :  { %v345_v7 = vld [vmem:[%s477_s0 + $0x40] sm:$0xff]  ;;  %v339_v12 = vld [vmem:[%s477_s0 + $0x10] sm:$0xff]  ;;  %v338_v13 = vld [vmem:[%s477_s0 + $0x8] sm:$0xff] }
   0x5   :  { %v330_v8 = vld [vmem:[%s478_s1 + $0x4] sm:$0xf]  ;;  %v252_v15 = vld [vmem:[%s478_s1] sm:$0xf]  ;;  %v331_v16 = vld [vmem:[%s478_s1 + $0x4] sm:$0xf0] }
   0x6   :  { %166 = vmatpush.bf16.msra.mxu0 %v343_v2  ;;  %350 = vmatpush.bf16.msra.mxu3 %v343_v2  ;;  %v257_v10 = vor.u32 %v330_v8, %v254_v9  ;;  %v337_v14 = vld [vmem:[%s477_s0] sm:$0xff]  ;;  %v260_v17 = vld [vmem:[%s478_s1 + $0x10] sm:$0xf]  ;;  %v333_v18 = vld [vmem:[%s478_s1 + $0x14] sm:$0xf0]  ;;  %v253_v21 = vor.u32 %v331_v16, %v252_v15 }
   0x7   :  { %194 = vmatpush.bf16.msra.mxu1 %v347_v3  ;;  %v332_v19 = vld [vmem:[%s478_s1 + $0x14] sm:$0xf]  ;;  %v262_v20 = vld [vmem:[%s478_s1 + $0x18] sm:$0xf0]  ;;  %v261_v22 = vor.u32 %v333_v18, %v260_v17  ;;  %v268_v24 = vld [vmem:[%s478_s1 + $0x20] sm:$0xf] }
   0x8   :  { %v265_v23 = vor.u32 %v332_v19, %v262_v20  ;;  %v335_v25 = vld [vmem:[%s478_s1 + $0x24] sm:$0xf0]  ;;  %v334_v26 = vld [vmem:[%s478_s1 + $0x24] sm:$0xf]  ;;  %v270_v27 = vld [vmem:[%s478_s1 + $0x28] sm:$0xf0] }
   0x9   :  { %v269_v28 = vor.u32 %v335_v25, %v268_v24  ;;  %v273_v29 = vor.u32 %v334_v26, %v270_v27  ;;  %v24_v36 = vld [vmem:[%s478_s1 + $0x60] sm:$0xf]  ;;  %v23_v37 = vld [vmem:[%s478_s1 + $0x58] sm:$0xf]  ;;  %v22_v41 = vld [vmem:[%s478_s1 + $0x50] sm:$0xf] }
   0xa   :  { %167 = vmatpush.bf16.msra.mxu0 %v342_v4  ;;  %351 = vmatpush.bf16.msra.mxu3 %v342_v4  ;;  %v30_v40 = vunpack.c.l.bf16 %v24_v36  ;;  %v25_v42 = vld [vmem:[%s478_s1 + $0x68] sm:$0xf]  ;;  %v29_v43 = vunpack.c.l.bf16 %v23_v37  ;;  %v28_v44 = vunpack.c.l.bf16 %v22_v41  ;;  %v327_v61 = vld [vmem:[%s478_s1 + $0x30] sm:$0xf]  ;;  %v336_v62 = vld [vmem:[%s478_s1 + $0x34] sm:$0xf0] }
   0xb   :  { %195 = vmatpush.bf16.msra.mxu1 %v346_v5  ;;  %v31_v46 = vunpack.c.l.bf16 %v25_v42  ;;  %v328_v0 = vor.u32 %v336_v62, %v327_v61  ;;  %v20_v1 = vld [vmem:[%s478_s1 + $0x40] sm:$0xf]  ;;  %v21_v5 = vld [vmem:[%s478_s1 + $0x48] sm:$0xf] }
   0xc   :  { %v26_v3 = vunpack.c.l.bf16 %v20_v1 }
   0xe   :  { %168 = vmatpush.bf16.msra.mxu0 %v341_v6  ;;  %352 = vmatpush.bf16.msra.mxu3 %v341_v6  ;;  %v27_v6 = vunpack.c.l.bf16 %v21_v5 }
   0xf   :  { %196 = vmatpush.bf16.msra.mxu1 %v345_v7 }
  0x12   :  { %322 = vmatmul.msk.bf16.vlgmr.msra.gmra.mxu1 %vm155_vm0, %v257_v10  ;;  %169 = vmatpush.bf16.msra.mxu0 %v340_v11 }
  0x13   :  { %353 = vmatpush.bf16.msra.mxu3 %v340_v11 }
  0x16   :  { %170 = vmatpush.bf16.msra.mxu0 %v339_v12 }
  0x17   :  { %354 = vmatpush.bf16.msra.mxu3 %v339_v12 }
  0x1a   :  { %171 = vmatpush.bf16.msra.mxu0 %v338_v13 }
  0x1b   :  { %355 = vmatpush.bf16.msra.mxu3 %v338_v13 }
  0x1e   :  { %172 = vmatpush.bf16.msra.mxu0 %v337_v14 }
  0x1f   :  { %356 = vmatpush.bf16.msra.mxu3 %v337_v14 }
  0x21   :  { %173 = vmatmul.bf16.vlgmr.msra.gmra.mxu0 %v253_v21 }
  0x22   :  { %178 = vmatmul.bf16.vlgmr.msra.gmra.mxu3 %v261_v22  ;;  %323 = vmatmul.msk.bf16.gmra.mxu1 %vm155_vm0, %v265_v23 }
  0x32   :  { %183 = vmatmul.bf16.gmra.mxu3 %v269_v28  ;;  %324 = vmatmul.msk.bf16.gmra.mxu1 %vm155_vm0, %v273_v29 }
  0x8f   :  { %v198_v30 = vpop.f32.mrf.mxu1 }
  0x97   :  { %v200_v31 = vpop.f32.mrf.mxu1 }
  0x9e   :  { %v174_v2 = vpop.f32.mrf.mxu0 }
  0x9f   :  { %v203_v32 = vpop.f32.mrf.mxu1  ;;  %v175_v4 = vadd.f32 %v174_v2, %v26_v3 }
  0xa1   :  { %v199_v7 = vadd.f32 %v198_v30, %v175_v4 }
  0xa5   :  { %v179_v33 = vpop.f32.mrf.mxu3 }
  0xa6   :  { %v180_v49 = vadd.f32 %v179_v33, %v28_v44  ;;  %v176_v8 = vpop.f32.mrf.mxu0 }
  0xa7   :  { %v205_v34 = vpop.f32.mrf.mxu1  ;;  %v177_v11 = vadd.f32 %v176_v8, %v27_v6 }
  0xa8   :  { %v204_v55 = vadd.f32 %v203_v32, %v180_v49 }
  0xa9   :  { %v201_v12 = vadd.f32 %v200_v31, %v177_v11 }
  0xaa   :  { %v213_v60 = vmax.f32 %v204_v55, 0.0 }
  0xad   :  { %v181_v35 = vpop.f32.mrf.mxu3 }
  0xae   :  { %v182_v47 = vadd.f32 %v181_v35, %v29_v43 }
  0xaf   :  { %v208_v38 = vpop.f32.mrf.mxu1 }
  0xb0   :  { %v206_v53 = vadd.f32 %v205_v34, %v182_v47 }
  0xb2   :  { %v214_v58 = vmax.f32 %v206_v53, 0.0 }
  0xb4   :  { %v217_v63 = vpack.c.bf16 %v214_v58, %v213_v60 }
  0xb5   :  { %v184_v39 = vpop.f32.mrf.mxu3 }
  0xb6   :  { %v185_v45 = vadd.f32 %v184_v39, %v30_v40 }
  0xb7   :  { %v210_v52 = vpop.f32.mrf.mxu1 }
  0xb8   :  { %v209_v51 = vadd.f32 %v208_v38, %v185_v45 }
  0xba   :  { %v215_v56 = vmax.f32 %v209_v51, 0.0 }
  0xbd   :  { %v186_v48 = vpop.f32.mrf.mxu3 }
  0xbe   :  { %v187_v50 = vadd.f32 %v186_v48, %v31_v46 }
  0xc0   :  { %v211_v54 = vadd.f32 %v210_v52, %v187_v50 }
  0xc2   :  { %v216_v57 = vmax.f32 %v211_v54, 0.0 }
  0xc4   :  { %v218_v59 = vpack.c.bf16 %v216_v57, %v215_v56 }
  0xc6   :  { %234 = vmatpush.bf16.msra.mxu2 %v218_v59 }
  0xca   :  { %235 = vmatpush.bf16.msra.mxu2 %v217_v63 }
  0xcd   :  { %329 = vmatmul.msk.bf16.vlgmr.msra.gmra.mxu2 %vm224_vm1, %v328_v0 }
 0x150   :  { %v237_v9 = vpop.f32.mrf.mxu2 }
 0x151   :  { %v242_v10 = vadd.f32 %v237_v9, %v199_v7 }
 0x153   :  { %244 = vst [vmem:[%s479_s2] sm:$0xff] %v242_v10 }
 0x158   :  { %v239_v13 = vpop.f32.mrf.mxu2 }
 0x159   :  { %v243_v14 = vadd.f32 %v239_v13, %v201_v12 }
 0x15b   :  { %245 = vst [vmem:[%s479_s2 + $0x8] sm:$0xff] %v243_v14 }

</bundles_post_ra>
